<compile_context>
chip_gen: v7x
topology: tpu7x:2x2x1
jax: 0.10.0
libtpu: 0.0.40
codegen_flags: <defaults>
</compile_context>

<pallas_src>
import jax
import jax.numpy as jnp
from jax.experimental import pallas as pl
from jax.experimental.pallas import tpu as pltpu


def _default_batch_tile(B, row_bytes):
    # Prefer >= 2 grid steps (DMA/compute overlap + v7x megacore sharding),
    # 8-aligned sublane tiles, and <= ~8 MiB of double-buffered activation per
    # step so one block fits the scoped-VMEM defaults on v5e/v6e/v7x.
    for bt in (512, 256, 128, 64, 32, 16, 8):
        if B % bt == 0 and B // bt >= 2 and 2 * bt * row_bytes <= 8 * 2**20:
            return bt
    return B


def convtext_forward(ids, emb_table, conv_w, conv_b, lin_w, lin_b,
                     *, batch_tile=None, operand_dtype=jnp.bfloat16):
    B, L = ids.shape
    n_emb, D = emb_table.shape
    n_kernel, Dw, K = conv_w.shape
    assert Dw == D, "conv in_channels must equal emb_dim"
    l_out = L - K + 1                           # Conv1d 'valid' output length
    assert l_out >= K, "sequence too short for MaxPool1d(kernel_size)"
    hidden = (l_out - K) // K + 1               # MaxPool1d(K, stride=K) output length
    HN = hidden * n_kernel
    n_outputs = lin_w.shape[0]

    l_out_pad = ((l_out + 7) // 8) * 8          # sublane-aligned conv-time axis
    CH = ((HN + 127) // 128) * 128              # lane-padded channel axis (HN -> 128)
    n_pad = ((n_outputs + 127) // 128) * 128    # lane-dense output stores
    KD = K * D

    x_bytes = jnp.dtype(operand_dtype).itemsize
    row_bytes = l_out_pad * KD * x_bytes        # im2col bytes per batch row

    bt = _default_batch_tile(B, row_bytes) if batch_tile is None else batch_tile
    assert B % bt == 0 and (bt == B or bt % 8 == 0), "bad batch tile"

    # ---------------- wrapper-side prep (plain JAX) ----------------
    # TODO(synk): for very large B, fuse the embedding gather into the kernel
    # (scalar-prefetch ids + DMA row gather) instead of materializing x in HBM.
    # TODO(synk): for production-sized L/D, switch to the accumulate-over-k
    # shifted-matmul form to avoid the K-fold im2col HBM/VMEM expansion.
    e = jnp.maximum(jnp.take(emb_table.astype(operand_dtype), ids, axis=0), 0)   # relu(emb) (B, L, D)
    # im2col: column k*D + d of row (b, t) holds e[b, t+k, d]
    xk = jnp.concatenate([e[:, k:k + l_out, :] for k in range(K)], axis=-1)       # (B, l_out, K*D)
    xk = jnp.pad(xk, ((0, 0), (0, l_out_pad - l_out), (0, 0)))                    # pad t to mult of 8
    xk = xk.reshape(B * l_out_pad, KD)                                            # 2-D matmul LHS

    # Conv weight: row k*D + d <-> conv_w[o, d, k]; columns tiled `hidden` times
    # (j = h*n_kernel + o) and zero-padded to 128 lanes.  Bias tiled/padded too.
    wck = jnp.transpose(conv_w, (2, 1, 0)).reshape(KD, n_kernel)
    wck = jnp.tile(wck, (1, hidden))
    wck = jnp.pad(wck, ((0, 0), (0, CH - HN))).astype(operand_dtype)              # (K*D, CH)
    bc = jnp.pad(jnp.tile(conv_b, hidden), (0, CH - HN)).reshape(1, CH).astype(jnp.float32)

    # 0/1 maxpool window mask (zero on padded t rows and padded channel columns).
    t_idx = jnp.arange(l_out_pad, dtype=jnp.int32)[:, None]
    j_idx = jnp.arange(CH, dtype=jnp.int32)[None, :]
    h_idx = j_idx // n_kernel
    pool_mask = ((j_idx < HN) & (t_idx >= h_idx * K)
                 & (t_idx < h_idx * K + K)).astype(jnp.float32)                   # (l_out_pad, CH)

    # Linear weight permuted so input-feature index j = h*n_kernel + o, then
    # padded (zero rows for the padded channels, zero output columns to n_pad).
    wl = jnp.transpose(lin_w.reshape(n_outputs, n_kernel, hidden), (2, 1, 0)).reshape(HN, n_outputs)
    wl = jnp.pad(wl, ((0, CH - HN), (0, n_pad - n_outputs))).astype(operand_dtype)  # (CH, n_pad)
    bl = jnp.pad(lin_b, (0, n_pad - n_outputs)).reshape(1, n_pad).astype(jnp.float32)

    # ---------------- kernel ----------------
    def kernel(xk_ref, wck_ref, bc_ref, mask_ref, wl_ref, bl_ref, out_ref):
        # Conv1d = ONE unbatched, weight-stationary MXU matmul over the im2col:
        #   (bt*l_out_pad, K*D) @ (K*D, 128) -> f32
        conv = jnp.dot(xk_ref[...], wck_ref[...], preferred_element_type=jnp.float32)
        conv = jnp.maximum(conv + bc_ref[...], 0.0)          # bias + relu, full 128-lane vregs
        # MaxPool1d(K, stride=K): window mask multiply + single reduce over t.
        # Only valid because values are post-ReLU (>= 0); switch to a
        # -inf/where form if the ReLU or bias handling ever changes.
        conv = conv.reshape(bt, l_out_pad, CH) * mask_ref[...]
        pooled = jnp.max(conv, axis=1)                       # (bt, CH), j = h*n_kernel + o order
        # Linear: one MXU matmul; lane-dense padded output block store.
        out_ref[...] = jnp.dot(pooled.astype(wl_ref.dtype), wl_ref[...],
                               preferred_element_type=jnp.float32) + bl_ref[...]

    # VMEM budget with headroom (v7x has 64 MiB physical / 32 MiB scoped default;
    # v5e scoped default is 16 MiB) -- keep the request comfortably under 64 MiB.
    per_step = (2 * bt * l_out_pad * KD * x_bytes            # double-buffered activation block
                + 2 * bt * n_pad * 4                         # double-buffered output block
                + 2 * (KD * CH + CH * n_pad) * x_bytes       # resident weights
                + 2 * (CH + l_out_pad * CH + n_pad) * 4      # bias / mask
                + bt * l_out_pad * CH * 4)                   # f32 conv intermediate
    vmem_limit = int(min(max(2 * per_step, 32 * 2**20), 48 * 2**20))

    y = pl.pallas_call(
        kernel,
        out_shape=jax.ShapeDtypeStruct((B, n_pad), jnp.float32),
        grid=(B // bt,),
        in_specs=[
            pl.BlockSpec((bt * l_out_pad, KD), lambda b: (b, 0)),   # im2col activations (batch-tiled)
            pl.BlockSpec((KD, CH), lambda b: (0, 0)),               # conv weight (resident)
            pl.BlockSpec((1, CH), lambda b: (0, 0)),                # conv bias (tiled+padded)
            pl.BlockSpec((l_out_pad, CH), lambda b: (0, 0)),        # pool window mask
            pl.BlockSpec((CH, n_pad), lambda b: (0, 0)),            # linear weight (resident)
            pl.BlockSpec((1, n_pad), lambda b: (0, 0)),             # linear bias
        ],
        out_specs=pl.BlockSpec((bt, n_pad), lambda b: (b, 0)),
        compiler_params=pltpu.CompilerParams(
            dimension_semantics=("parallel",),
            vmem_limit_bytes=vmem_limit,
        ),
    )(xk, wck, bc, pool_mask, wl, bl)
    return y[:, :n_outputs]


def convtext_reference(ids, emb_table, conv_w, conv_b, lin_w, lin_b):
    """Pure-JAX f32 reference mirroring the PyTorch forward."""
    B, L = ids.shape
    n_kernel, D, K = conv_w.shape
    l_out = L - K + 1
    hidden = (l_out - K) // K + 1
    e = jnp.maximum(jnp.take(emb_table, ids, axis=0), 0.0)       # (B, L, D)
    x = jnp.transpose(e, (0, 2, 1))                              # (B, D, L)
    cols = jnp.stack([x[:, :, k:k + l_out] for k in range(K)], axis=-1)  # (B, D, l_out, K)
    conv = jnp.einsum('bdtk,odk->bot', cols, conv_w) + conv_b[None, :, None]
    conv = jnp.maximum(conv, 0.0)                                # (B, n_kernel, l_out)
    pooled = conv[:, :, :hidden * K].reshape(B, n_kernel, hidden, K).max(axis=-1)
    flat = pooled.reshape(B, n_kernel * hidden)
    return flat @ lin_w.T + lin_b[None, :]


if __name__ == "__main__":
    # Small shapes consistent with the module (seq_len must equal emb_dim).
    n_emb, emb_dim, n_kernel, kernel_size, n_outputs, pad_idx = 50, 16, 8, 3, 5, 0
    B, L = 2, emb_dim
    hidden = int((emb_dim - kernel_size + 1 - kernel_size) / kernel_size + 1)

    key = jax.random.PRNGKey(0)
    k_ids, k_emb, k_cw, k_cb, k_lw, k_lb = jax.random.split(key, 6)

    ids = jax.random.randint(k_ids, (B, L), 0, n_emb, dtype=jnp.int32)
    ids = ids.at[0, 0].set(pad_idx)  # exercise the padding row

    emb_table = jax.random.normal(k_emb, (n_emb, emb_dim), jnp.float32)
    emb_table = emb_table.at[pad_idx].set(0.0)      # padding_idx row is zeros
    conv_w = 0.1 * jax.random.normal(k_cw, (n_kernel, emb_dim, kernel_size), jnp.float32)
    conv_b = 0.1 * jax.random.normal(k_cb, (n_kernel,), jnp.float32)
    lin_w = 0.1 * jax.random.normal(k_lw, (n_outputs, hidden * n_kernel), jnp.float32)
    lin_b = 0.1 * jax.random.normal(k_lb, (n_outputs,), jnp.float32)

    ref = convtext_reference(ids, emb_table, conv_w, conv_b, lin_w, lin_b)

    # f32 operand path: structural check against the f32 reference.
    out_f32 = jax.block_until_ready(
        convtext_forward(ids, emb_table, conv_w, conv_b, lin_w, lin_b,
                         operand_dtype=jnp.float32))
    assert out_f32.shape == (B, n_outputs), out_f32.shape
    assert jnp.allclose(out_f32, ref, atol=5e-3, rtol=5e-3), (out_f32, ref)

    # Default bf16 MXU-operand path: looser tolerance for bf16 rounding.
    out_bf16 = jax.block_until_ready(
        convtext_forward(ids, emb_table, conv_w, conv_b, lin_w, lin_b))
    assert out_bf16.shape == (B, n_outputs), out_bf16.shape
    assert jnp.allclose(out_bf16, ref, atol=5e-2, rtol=5e-2), (out_bf16, ref)

    print("KERNEL_OK")
</pallas_src>

<mosaic_0001>
module attributes {stable_mosaic.version = 11 : i64} {
  func.func @kernel(%arg0: i32, %arg1: memref<32x48xf32, #tpu.memory_space<vmem>>, %arg2: memref<48x128xf32, #tpu.memory_space<vmem>>, %arg3: memref<1x128xf32, #tpu.memory_space<vmem>>, %arg4: memref<16x128xf32, #tpu.memory_space<vmem>>, %arg5: memref<128x128xf32, #tpu.memory_space<vmem>>, %arg6: memref<1x128xf32, #tpu.memory_space<vmem>>, %arg7: memref<2x128xf32, #tpu.memory_space<vmem>>) attributes {dimension_semantics = [#tpu.dimension_semantics<parallel>], iteration_bounds = array<i64: 1>, scalar_prefetch = 0 : i64, scratch_operands = 0 : i64, tpu.core_type = #tpu.core_type<tc>, window_params = [{transform_indices = @transform_0, window_bounds = array<i64: 32, 48>}, {pipeline_mode = #tpu.pipeline_mode<synchronous>, transform_indices = @transform_1, window_bounds = array<i64: 48, 128>}, {pipeline_mode = #tpu.pipeline_mode<synchronous>, transform_indices = @transform_2, window_bounds = array<i64: 1, 128>}, {pipeline_mode = #tpu.pipeline_mode<synchronous>, transform_indices = @transform_3, window_bounds = array<i64: 16, 128>}, {pipeline_mode = #tpu.pipeline_mode<synchronous>, transform_indices = @transform_4, window_bounds = array<i64: 128, 128>}, {pipeline_mode = #tpu.pipeline_mode<synchronous>, transform_indices = @transform_5, window_bounds = array<i64: 1, 128>}, {transform_indices = @transform_6, window_bounds = array<i64: 2, 128>}]} {
    %c0 = arith.constant 0 : index
    %c0_0 = arith.constant 0 : index
    %0 = vector.load %arg1[%c0, %c0_0] : memref<32x48xf32, #tpu.memory_space<vmem>>, vector<32x48xf32>
    %c0_1 = arith.constant 0 : index
    %c0_2 = arith.constant 0 : index
    %1 = vector.load %arg2[%c0_1, %c0_2] : memref<48x128xf32, #tpu.memory_space<vmem>>, vector<48x128xf32>
    %cst = arith.constant dense<0.000000e+00> : vector<32x128xf32>
    %2 = tpu.matmul %0, %1, %cst {dimension_numbers = #tpu.dot_dimension_numbers<[1], [0], [0], [1], [0, 0, 1, 1], [], []>} : vector<32x48xf32>, vector<48x128xf32>, vector<32x128xf32> -> vector<32x128xf32>
    %c0_3 = arith.constant 0 : index
    %c0_4 = arith.constant 0 : index
    %3 = vector.load %arg3[%c0_3, %c0_4] : memref<1x128xf32, #tpu.memory_space<vmem>>, vector<1x128xf32>
    %4 = vector.broadcast %3 : vector<1x128xf32> to vector<32x128xf32>
    %5 = arith.addf %2, %4 : vector<32x128xf32>
    %cst_5 = arith.constant 0.000000e+00 : f32
    %6 = vector.broadcast %cst_5 : f32 to vector<32x128xf32>
    %7 = arith.maximumf %5, %6 : vector<32x128xf32>
    %8 = vector.shape_cast %7 : vector<32x128xf32> to vector<2x16x128xf32>
    %c0_6 = arith.constant 0 : index
    %c0_7 = arith.constant 0 : index
    %9 = vector.load %arg4[%c0_6, %c0_7] : memref<16x128xf32, #tpu.memory_space<vmem>>, vector<16x128xf32>
    %10 = vector.shape_cast %9 : vector<16x128xf32> to vector<1x16x128xf32>
    %11 = vector.broadcast %10 : vector<1x16x128xf32> to vector<2x16x128xf32>
    %12 = arith.mulf %8, %11 : vector<2x16x128xf32>
    %cst_8 = arith.constant dense<0xFF800000> : vector<2x128xf32>
    %13 = vector.multi_reduction <maximumf>, %12, %cst_8 [1] : vector<2x16x128xf32> to vector<2x128xf32>
    %c0_9 = arith.constant 0 : index
    %c0_10 = arith.constant 0 : index
    %14 = vector.load %arg5[%c0_9, %c0_10] : memref<128x128xf32, #tpu.memory_space<vmem>>, vector<128x128xf32>
    %cst_11 = arith.constant dense<0.000000e+00> : vector<2x128xf32>
    %15 = tpu.matmul %13, %14, %cst_11 {dimension_numbers = #tpu.dot_dimension_numbers<[1], [0], [0], [1], [0, 0, 1, 1], [], []>} : vector<2x128xf32>, vector<128x128xf32>, vector<2x128xf32> -> vector<2x128xf32>
    %c0_12 = arith.constant 0 : index
    %c0_13 = arith.constant 0 : index
    %16 = vector.load %arg6[%c0_12, %c0_13] : memref<1x128xf32, #tpu.memory_space<vmem>>, vector<1x128xf32>
    %17 = vector.broadcast %16 : vector<1x128xf32> to vector<2x128xf32>
    %18 = arith.addf %15, %17 : vector<2x128xf32>
    %c0_14 = arith.constant 0 : index
    %c0_15 = arith.constant 0 : index
    %19 = vector.load %arg7[%c0_14, %c0_15] : memref<2x128xf32, #tpu.memory_space<vmem>>, vector<2x128xf32>
    tpu.vector_store %arg7[%c0_14, %c0_15], %18 {strides = array<i32>} : memref<2x128xf32, #tpu.memory_space<vmem>>, vector<2x128xf32>,
    return
  }
  func.func @transform_0(%arg0: i32) -> (i32, i32) {
    %c0_i32 = arith.constant 0 : i32
    %c0_i32_0 = arith.constant 0 : i32
    return %arg0, %c0_i32 : i32, i32
  }
  func.func @transform_1(%arg0: i32) -> (i32, i32) {
    %c0_i32 = arith.constant 0 : i32
    %c0_i32_0 = arith.constant 0 : i32
    %c0_i32_1 = arith.constant 0 : i32
    return %c0_i32, %c0_i32_0 : i32, i32
  }
  func.func @transform_2(%arg0: i32) -> (i32, i32) {
    %c0_i32 = arith.constant 0 : i32
    %c0_i32_0 = arith.constant 0 : i32
    %c0_i32_1 = arith.constant 0 : i32
    return %c0_i32, %c0_i32_0 : i32, i32
  }
  func.func @transform_3(%arg0: i32) -> (i32, i32) {
    %c0_i32 = arith.constant 0 : i32
    %c0_i32_0 = arith.constant 0 : i32
    %c0_i32_1 = arith.constant 0 : i32
    return %c0_i32, %c0_i32_0 : i32, i32
  }
  func.func @transform_4(%arg0: i32) -> (i32, i32) {
    %c0_i32 = arith.constant 0 : i32
    %c0_i32_0 = arith.constant 0 : i32
    %c0_i32_1 = arith.constant 0 : i32
    return %c0_i32, %c0_i32_0 : i32, i32
  }
  func.func @transform_5(%arg0: i32) -> (i32, i32) {
    %c0_i32 = arith.constant 0 : i32
    %c0_i32_0 = arith.constant 0 : i32
    %c0_i32_1 = arith.constant 0 : i32
    return %c0_i32, %c0_i32_0 : i32, i32
  }
  func.func @transform_6(%arg0: i32) -> (i32, i32) {
    %c0_i32 = arith.constant 0 : i32
    %c0_i32_0 = arith.constant 0 : i32
    return %arg0, %c0_i32 : i32, i32
  }
}

</mosaic_0001>

<bundles_post_ra>
// kernel: tpu_custom_call.1
= control target key start
LH: loop header
LB: loop body
LE: loop exit
PB: predicated region body
PF: predicated region fallthrough
CT: control target
= control target key end

     0   :  { %11 = vsyncpa [#allocation3], 0  ;;  %s733_s0 = inlined_call_operand.hbm [shape: f32[32,48], index: 0, kind: input, shape index: {}]   ;;  %s734_s1 = inlined_call_operand.hbm [shape: f32[48,128], index: 1, kind: input, shape index: {}]   ;;  %s735_s2 = inlined_call_operand.vmem [shape: f32[1,128], index: 2, kind: input, shape index: {}]   ;;  %s736_s3 = inlined_call_operand.hbm [shape: f32[16,128], index: 3, kind: input, shape index: {}]   ;;  %s737_s4 = inlined_call_operand.hbm [shape: f32[128,128], index: 4, kind: input, shape index: {}]   ;;  %s738_s5 = inlined_call_operand.vmem [shape: f32[1,128], index: 5, kind: input, shape index: {}]   ;;  %s739_s6 = inlined_call_operand.hbm [shape: f32[2,128], index: 6, kind: output, shape index: {}]  }
   0x1   :  { %12 = vsyncpa [#allocation6], 0 }
   0x2   :  { %13 = vsyncpa [#allocation9], 0 }
   0x3   :  { %14 = vsyncpa [#allocation4], 0  ;;  %s584_s21 = smov [#allocation5]   ;;  %s585_s23 = smov [#allocation2]  }
   0x4   :  { %s32_s22 = sshll.u32 %s584_s21, 4  ;;  %s20_s24 = sshll.u32 %s585_s23, 4  ;;  %s33_s22 = int_to_ptr.vmem [resolvable:$true] %s32_s22  ;;  %s629_s24 = int_to_ptr.vmem [resolvable:$true] %s20_s24 }
   0x5   :  { %s466_s27 = scalar_lea.hbm %s734_s1, 768 }
   0x6   :  { %p467_p0 = scmp.ne.s32.totalorder %s734_s1, %s466_s27  ;;  %p470_p1 = scmp.lt.u32.totalorder %s466_s27, %s734_s1 }
   0x8   :  { %p472_p2 = pnand %p470_p1, %p467_p0 }
   0xa   :  { %475 = shalt.err (!%p472_p2)
}
   0xb   :  { %s476_s8 = scalar_lea.vmem %s33_s22, 768  ;;  %p481_p4 = scmp.lt.s32.totalorder %s33_s22, %s33_s22 }
   0xc   :  { %p477_p3 = scmp.ne.s32.totalorder %s33_s22, %s476_s8  ;;  %p482_p5 = scmp.lt.s32.totalorder %s476_s8, %s476_s8 }
   0xe   :  { %p483_p6 = por %p482_p5, %p481_p4 }
  0x10   :  { %p484_p7 = pnand %p483_p6, %p477_p3 }
  0x12   :  { %487 = shalt.err (!%p484_p7)
}
  0x13   :  { %s586_s9 = smov 128   ;;  %s587_s10 = smov 8  }
  0x14   :  { %38 = dma.hbm_to_vmem [thread:$0]  %s734_s1, 768, %s33_s22, [#allocation6], %s586_s9, %s586_s9, %s587_s10  }
  0x15   :  { %s488_s15 = scalar_lea.hbm %s733_s0, 512 }
  0x16   :  { %p489_p8 = scmp.ne.s32.totalorder %s733_s0, %s488_s15  ;;  %p492_p9 = scmp.lt.u32.totalorder %s488_s15, %s733_s0 }
  0x18   :  { %p494_p10 = pnand %p492_p9, %p489_p8 }
  0x1a   :  { %497 = shalt.err (!%p494_p10)
}
  0x1b   :  { %s498_s20 = scalar_lea.vmem %s629_s24, 512  ;;  %p503_p12 = scmp.lt.s32.totalorder %s629_s24, %s629_s24 }
  0x1c   :  { %p499_p11 = scmp.ne.s32.totalorder %s629_s24, %s498_s20  ;;  %p504_p13 = scmp.lt.s32.totalorder %s498_s20, %s498_s20 }
  0x1e   :  { %p505_p0 = por %p504_p13, %p503_p12 }
  0x20   :  { %p506_p1 = pnand %p505_p0, %p499_p11 }
  0x22   :  { %509 = shalt.err (!%p506_p1)
}
  0x23   :  { %26 = dma.hbm_to_vmem [thread:$0]  %s733_s0, 512, %s629_s24, [#allocation3], %s586_s9, %s586_s9, %s587_s10  }
  0x24   :  { %s588_s22 = smov [#allocation7]   ;;  %s589_s25 = smov [#allocation8]  }
  0x25   :  { %s46_s23 = sshll.u32 %s588_s22, 4  ;;  %s58_s26 = sshll.u32 %s589_s25, 4  ;;  %s47_s23 = int_to_ptr.vmem [resolvable:$true] %s46_s23  ;;  %s666_s26 = int_to_ptr.vmem [resolvable:$true] %s58_s26 }
  0x26   :  { %s510_s29 = scalar_lea.hbm %s736_s3, 256 }
  0x27   :  { %p511_p2 = scmp.ne.s32.totalorder %s736_s3, %s510_s29  ;;  %p514_p3 = scmp.lt.u32.totalorder %s510_s29, %s736_s3 }
  0x29   :  { %p516_p4 = pnand %p514_p3, %p511_p2 }
  0x2b   :  { %519 = shalt.err (!%p516_p4)
}
  0x2c   :  { %s520_s0 = scalar_lea.vmem %s47_s23, 256  ;;  %p525_p6 = scmp.lt.s32.totalorder %s47_s23, %s47_s23 }
  0x2d   :  { %p521_p5 = scmp.ne.s32.totalorder %s47_s23, %s520_s0  ;;  %p526_p7 = scmp.lt.s32.totalorder %s520_s0, %s520_s0 }
  0x2f   :  { %p527_p8 = por %p526_p7, %p525_p6 }
  0x31   :  { %p528_p9 = pnand %p527_p8, %p521_p5 }
  0x33   :  { %531 = shalt.err (!%p528_p9)
}
  0x34   :  { %52 = dma.hbm_to_vmem [thread:$0]  %s736_s3, 256, %s47_s23, [#allocation6], %s586_s9, %s586_s9, %s587_s10  }
  0x35   :  { %s532_s15 = scalar_lea.hbm %s737_s4, 2048 }
  0x36   :  { %p533_p10 = scmp.ne.s32.totalorder %s737_s4, %s532_s15  ;;  %p536_p11 = scmp.lt.u32.totalorder %s532_s15, %s737_s4 }
  0x38   :  { %p538_p12 = pnand %p536_p11, %p533_p10 }
  0x3a   :  { %541 = shalt.err (!%p538_p12)
}
  0x3b   :  { %s542_s20 = scalar_lea.vmem %s666_s26, 2048  ;;  %p547_p0 = scmp.lt.s32.totalorder %s666_s26, %s666_s26 }
  0x3c   :  { %p543_p13 = scmp.ne.s32.totalorder %s666_s26, %s542_s20  ;;  %p548_p1 = scmp.lt.s32.totalorder %s542_s20, %s542_s20 }
  0x3e   :  { %p549_p2 = por %p548_p1, %p547_p0 }
  0x40   :  { %p550_p3 = pnand %p549_p2, %p543_p13 }
  0x42   :  { %553 = shalt.err (!%p550_p3)
}
  0x43   :  { %64 = dma.hbm_to_vmem [thread:$0]  %s737_s4, 2048, %s666_s26, [#allocation9], %s586_s9, %s586_s9, %s587_s10  }
  0x44   :  { %576 = dma.done.wait [#allocation3], 512  }
  0x45   :  { %577 = vsyncadd [#allocation3], 4294966784 }
  0x46   :  { %578 = dma.done.wait [#allocation6], 1024  }
  0x47   :  { %579 = vsyncadd [#allocation6], 4294966272 }
  0x48   :  { %580 = dma.done.wait [#allocation9], 2048  }
  0x49   :  { %581 = vsyncadd [#allocation9], 4294965248  ;;  %v590_v0 = vmov 0.0|0.0   ;;  %v83_v1 = vld [vmem:[#allocation5] sm:$0xff]  ;;  %v84_v2 = vld [vmem:[#allocation5 + $0x8] sm:$0xff]  ;;  %vm96_vm0 = vcmask 392192  }
  0x4a   :  { %432 = vmatprep.subr.bf16.mxu1 %v590_v0  ;;  %v85_v3 = vld [vmem:[#allocation5 + $0x10] sm:$0xff]  ;;  %v420_v4 = vpack.c.bf16 %v84_v2, %v83_v1  ;;  %v86_v5 = vld [vmem:[#allocation5 + $0x18] sm:$0xff]  ;;  %v87_v7 = vld [vmem:[#allocation5 + $0x20] sm:$0xff]  ;;  %vm591_vm1 = vmmov 0   ;;  %v592_v37 = vmov 0.0   ;;  %vm243_vm2 = vcmask 1041409  }
  0x4b   :  { %v424_v6 = vpack.c.bf16 %v86_v5, %v85_v3  ;;  %v88_v8 = vld [vmem:[#allocation5 + $0x28] sm:$0xff]  ;;  %v79_v9 = vld [vmem:[#allocation2] sm:$0xff]  ;;  %v81_v15 = vld [vmem:[#allocation2 + $0x10] sm:$0xff]  ;;  %417 = vmatprep.mubr.msk.f32.mxu1 %vm591_vm1, %v592_v37  ;;  %s593_s21 = smov [#allocation10]  }
  0x4c   :  { %421 = vmatprep.subr.bf16.mxu0 %v420_v4  ;;  %379 = vmatprep.mubr.msk.f32.mxu0 %vm96_vm0, %v79_v9  ;;  %v218_v10 = vld [vmem:[#allocation8] sm:$0xff]  ;;  %v219_v11 = vld [vmem:[#allocation8 + $0x8] sm:$0xff]  ;;  %v428_v13 = vpack.c.bf16 %v88_v8, %v87_v7  ;;  %v82_v16 = vld [vmem:[#allocation2 + $0x18] sm:$0xff]  ;;  %s323_s22 = sshll.u32 %s593_s21, 4  ;;  %s324_s22 = int_to_ptr.vmem [resolvable:$true] %s323_s22 }
  0x4d   :  { %423 = vmatpush3.bf16.msra.mxu0 %v420_v4  ;;  %v433_v12 = vpack.c.bf16 %v219_v11, %v218_v10  ;;  %v80_v14 = vld [vmem:[#allocation2 + $0x8] sm:$0xff]  ;;  %v220_v17 = vld [vmem:[#allocation8 + $0x10] sm:$0xff]  ;;  %v221_v18 = vld [vmem:[#allocation8 + $0x18] sm:$0xff]  ;;  %s554_s23 = scalar_lea.vmem %s324_s22, 32  ;;  %p559_p5 = scmp.lt.s32.totalorder %s324_s22, %s324_s22 }
  0x4e   :  { %425 = vmatprep.subr.bf16.mxu0 %v424_v6  ;;  %v436_v19 = vpack.c.bf16 %v221_v18, %v220_v17  ;;  %v222_v20 = vld [vmem:[#allocation8 + $0x20] sm:$0xff]  ;;  %v223_v21 = vld [vmem:[#allocation8 + $0x28] sm:$0xff]  ;;  %v224_v23 = vld [vmem:[#allocation8 + $0x30] sm:$0xff]  ;;  %p555_p4 = scmp.ne.s32.totalorder %s324_s22, %s554_s23  ;;  %p560_p6 = scmp.lt.s32.totalorder %s554_s23, %s554_s23 }
  0x4f   :  { %434 = vmatpush3.bf16.msra.mxu1 %v433_v12  ;;  %v439_v22 = vpack.c.bf16 %v223_v21, %v222_v20  ;;  %v225_v24 = vld [vmem:[#allocation8 + $0x38] sm:$0xff]  ;;  %v226_v26 = vld [vmem:[#allocation8 + $0x40] sm:$0xff]  ;;  %v227_v27 = vld [vmem:[#allocation8 + $0x48] sm:$0xff] }
  0x50   :  { %435 = vmatprep.subr.bf16.mxu1 %v590_v0  ;;  %v442_v25 = vpack.c.bf16 %v225_v24, %v224_v23  ;;  %v445_v28 = vpack.c.bf16 %v227_v27, %v226_v26  ;;  %v228_v29 = vld [vmem:[#allocation8 + $0x50] sm:$0xff]  ;;  %v229_v30 = vld [vmem:[#allocation8 + $0x58] sm:$0xff]  ;;  %v230_v32 = vld [vmem:[#allocation8 + $0x60] sm:$0xff]  ;;  %p561_p7 = por %p560_p6, %p559_p5 }
  0x51   :  { %427 = vmatpush3.bf16.msra.mxu0 %v424_v6  ;;  %v448_v31 = vpack.c.bf16 %v229_v30, %v228_v29  ;;  %v231_v33 = vld [vmem:[#allocation8 + $0x68] sm:$0xff]  ;;  %v232_v35 = vld [vmem:[#allocation8 + $0x70] sm:$0xff]  ;;  %v233_v36 = vld [vmem:[#allocation8 + $0x78] sm:$0xff] }
  0x52   :  { %429 = vmatprep.subr.bf16.mxu0 %v428_v13  ;;  %v451_v34 = vpack.c.bf16 %v231_v33, %v230_v32  ;;  %v454_v38 = vpack.c.bf16 %v233_v36, %v232_v35  ;;  %v334_v39 = vld [vmem:[%s735_s2] ss:$0 sm:$0xff]  ;;  %v199_v43 = vld [vmem:[#allocation7 + $0x8] sm:$0xff]  ;;  %v198_v46 = vld [vmem:[#allocation7] sm:$0xff]  ;;  %p562_p8 = pnand %p561_p7, %p555_p4 }
  0x53   :  { %437 = vmatpush3.bf16.msra.mxu1 %v436_v19  ;;  %v339_v9 = vld [vmem:[%s738_s5] ss:$0 sm:$0xff] }
  0x54   :  { %438 = vmatprep.subr.bf16.mxu1 %v590_v0 }
  0x55   :  { %431 = vmatpush3.bf16.msra.mxu0 %v428_v13 }
  0x57   :  { %440 = vmatpush3.bf16.msra.mxu1 %v439_v22 }
  0x58   :  { %380 = vmatmul.mubr.msk.f32.vlgmr.msra.gmra.mrb[0].mxu0 %vm96_vm0, %v80_v14  ;;  %441 = vmatprep.subr.bf16.mxu1 %v590_v0 }
  0x59   :  { %382 = vmatprep.mubr.msk.f32.mxu0 %vm96_vm0, %v81_v15 }
  0x5b   :  { %443 = vmatpush3.bf16.msra.mxu1 %v442_v25 }
  0x5c   :  { %383 = vmatmul.mubr.msk.f32.gmra.mrb[2].mxu0 %vm96_vm0, %v82_v16  ;;  %444 = vmatprep.subr.bf16.mxu1 %v590_v0 }
  0x5f   :  { %446 = vmatpush3.bf16.msra.mxu1 %v445_v28 }
  0x60   :  { %447 = vmatprep.subr.bf16.mxu1 %v590_v0 }
  0x63   :  { %449 = vmatpush3.bf16.msra.mxu1 %v448_v31 }
  0x64   :  { %450 = vmatprep.subr.bf16.mxu1 %v590_v0 }
  0x67   :  { %452 = vmatpush3.bf16.msra.mxu1 %v451_v34 }
  0x68   :  { %453 = vmatprep.subr.bf16.mxu1 %v590_v0 }
  0x6b   :  { %455 = vmatpush3.bf16.msra.mxu1 %v454_v38 }
 0x12b   :  { %v381_v40 = vpop.f32.mrb[0].mxu0 }
 0x12c   :  { %v181_v41 = vadd.f32 %v381_v40, %v334_v39  ;;  %v175_v42 = vpop.f32.mrb[1].mxu0 }
 0x12d   :  { %v176_v44 = vadd.f32 %v334_v39, %v175_v42 }
 0x12e   :  { %v195_v45 = vmax.f32 %v181_v41, 0.0 }
 0x12f   :  { %v194_v47 = vmax.f32 %v176_v44, 0.0  ;;  %v384_v48 = vpop.f32.mrb[2].mxu0 }
 0x130   :  { %v201_v49 = vmul.f32 %v199_v43, %v195_v45  ;;  %v191_v50 = vadd.f32 %v384_v48, %v334_v39  ;;  %v185_v51 = vpop.f32.mrb[3].mxu0 }
 0x131   :  { %v200_v52 = vmul.f32 %v198_v46, %v194_v47  ;;  %v186_v53 = vadd.f32 %v334_v39, %v185_v51 }
 0x132   :  { %v197_v54 = vmax.f32 %v191_v50, 0.0 }
 0x133   :  { %v204_v55 = vmax.f32 %v200_v52, %v201_v49  ;;  %v196_v56 = vmax.f32 %v186_v53, 0.0 }
 0x134   :  { %v203_v57 = vmul.f32 %v199_v43, %v197_v54 }
 0x135   :  { %v205_v58 = vrot.slane %v204_v55, 4  ;;  %v202_v59 = vmul.f32 %v198_v46, %v196_v56 }
 0x137   :  { %v206_v60 = vmax.f32 %v204_v55, %v205_v58  ;;  %v211_v61 = vmax.f32 %v202_v59, %v203_v57 }
 0x139   :  { %v207_v62 = vrot.slane %v206_v60, 2  ;;  %v212_v63 = vrot.slane %v211_v61, 4 }
 0x13b   :  { %v213_v0 = vmax.f32 %v211_v61, %v212_v63  ;;  %v208_v1 = vmax.f32 %v206_v60, %v207_v62 }
 0x13d   :  { %v214_v2 = vrot.slane %v213_v0, 2  ;;  %v209_v3 = vrot.slane %v208_v1, 1 }
 0x13f   :  { %v215_v4 = vmax.f32 %v213_v0, %v214_v2  ;;  %v210_v6 = vmax.f32 %v208_v1, %v209_v3 }
 0x141   :  { %v216_v5 = vrot.slane %v215_v4, 1 }
 0x143   :  { %v217_v7 = vmax.f32 %v215_v4, %v216_v5 }
 0x145   :  { %v244_v8 = vsel %vm243_vm2, %v217_v7, %v210_v6 }
 0x146   :  { %418 = vmatmul.mubr.f32.vlgmr.msra.gmra.mrb[0].mxu1 %v244_v8 }
 0x219   :  { %v312_v10 = vpop.f32.mrb[0].mxu1 }
 0x21a   :  { %v313_v11 = vadd.f32 %v339_v9, %v312_v10  ;;  %v419_v12 = vpop.f32.mrb[1].mxu1 }
 0x21c   :  { %316 = vst [vmem:[#allocation10] sm:$0x3] %v313_v11 }
 0x21d   :  { %565 = shalt.err (!%p562_p8)
}
 0x21e   :  { %s566_s27 = scalar_lea.hbm %s739_s6, 32 }
 0x21f   :  { %p567_p9 = scmp.ne.s32.totalorder %s739_s6, %s566_s27  ;;  %p570_p10 = scmp.lt.u32.totalorder %s566_s27, %s739_s6 }
 0x221   :  { %p572_p11 = pnand %p570_p10, %p567_p9 }
 0x223   :  { %575 = shalt.err (!%p572_p11)
}
 0x224   :  { %326 = dma.vmem_to_hbm [thread:$0]  %s324_s22, 32, %s739_s6, [#allocation4]  }
 0x225   :  { %582 = dma.done.wait [#allocation4], 32  }
 0x226   :  { %583 = vsyncadd [#allocation4], 4294967264 }
 0x227   :  { %330 = vsyncpa [#allocation3], 1 }
 0x228   :  { %331 = vsyncpa [#allocation6], 1 }
 0x229   :  { %332 = vsyncpa [#allocation9], 1 }
 0x22a   :  { %333 = vsyncpa [#allocation4], 1 }

</bundles_post_ra>
